<compile_context>
chip_gen: v6e
topology: v6e:2x2x1
jax: 0.10.0
libtpu: 0.0.40
codegen_flags: <defaults>
</compile_context>

<pallas_src>
import jax
import jax.numpy as jnp
from jax.experimental import pallas as pl
from jax.experimental.pallas import tpu as pltpu

_MIB = 1024 * 1024


def _round_up(n, m):
    return ((n + m - 1) // m) * m


def _device_kind():
    try:
        return jax.devices()[0].device_kind.lower()
    except Exception:
        return ""


def _vmem_capacity_bytes():
    try:
        cap = int(pltpu.get_tpu_info().vmem_capacity_bytes)
        if cap > 0:
            return cap
    except Exception:
        pass
    return 64 * _MIB if "v7" in _device_kind() else 128 * _MIB


def _num_tensorcores():
    kind = _device_kind()
    if "v7" in kind:
        return 2
    if "v4" in kind or "v5p" in kind:
        return 2
    if "v5" in kind and "lite" not in kind and "v5e" not in kind:
        return 2  # bare "TPU v5" == v5p (megacore)
    return 1


def _min_token_tile(itemsize):
    # Minimum second-minor tile by element width: f32 -> 8, bf16 -> 16, 8-bit -> 32.
    return {4: 8, 2: 16, 1: 32}.get(int(itemsize), 8)


def _fits(tm, th, E, x_bytes, w_bytes, budget):
    est = (4 * tm * E * x_bytes        # x + out tiles, double-buffered
           + 6 * E * th * w_bytes      # W1^T, W2^T, W3^T tiles, double-buffered
           + tm * E * 4                # f32 accumulator scratch
           + 3 * tm * th * 4           # h1 / h2 / h f32 intermediates
           + 2 * _MIB)                 # Mosaic internal scratch margin
    return est <= budget


def _auto_tiles(M, E, H, x_bytes, w_bytes, budget, min_tm, tm, th):
    """Pick (tm, th): largest candidates that fit the VMEM budget."""
    H128 = _round_up(max(H, 1), 128)
    m_cap = _round_up(M, min_tm)

    def clamp_tm(t):
        return max(min_tm, _round_up(min(int(t), m_cap), min_tm))

    def clamp_th(t):
        return min(_round_up(int(t), 128), H128)

    tm_cands = ([clamp_tm(tm)] if tm is not None
                else [clamp_tm(t) for t in (512, 384, 256, 128, 64, 32, 16, 8)])
    th_cands = ([clamp_th(th)] if th is not None
                else [clamp_th(t) for t in (2048, 1024, 512, 384, 256, 128)])

    for tmc in tm_cands:
        for thc in th_cands:
            if _fits(tmc, thc, E, x_bytes, w_bytes, budget):
                return tmc, thc
    # Last resort: smallest candidates (tiny configs always land here or earlier).
    return tm_cands[-1], th_cands[-1]


def ffn_kernel(x_ref, w1t_ref, w2t_ref, w3t_ref, o_ref, acc_ref):
    # x_ref  : (tm, E)    token tile
    # w1t_ref: (E, th)    gate proj slice, pre-transposed (natural layout)
    # w2t_ref: (E, th)    up   proj slice, pre-transposed
    # w3t_ref: (th, E)    down proj slice, pre-transposed
    # o_ref  : (tm, E)
    # acc_ref: (tm, E)    f32 accumulator across the hidden (k) grid axis
    k = pl.program_id(1)

    @pl.when(k == 0)
    def _():
        acc_ref[...] = jnp.zeros_like(acc_ref)

    x = x_ref[...]
    # Natural-layout contractions -> straight MXU vmatmul, no per-step
    # relayout of the weight tiles.
    h1 = jnp.dot(x, w1t_ref[...], preferred_element_type=jnp.float32)
    h2 = jnp.dot(x, w2t_ref[...], preferred_element_type=jnp.float32)
    # SiLU gate in f32 (sigmoid on the EUP, mul on the VPU).
    h = (h1 * jax.nn.sigmoid(h1)) * h2
    acc_ref[...] += jnp.dot(h.astype(x.dtype), w3t_ref[...],
                            preferred_element_type=jnp.float32)

    @pl.when(k == pl.num_programs(1) - 1)
    def _():
        o_ref[...] = acc_ref[...].astype(o_ref.dtype)


def feed_forward(x, w1, w2, w3, *, tm=None, th=None, compute_dtype=None):
    """SwiGLU FFN.

    x      : (..., emb_dim)
    w1, w2 : (hidden_dim, emb_dim)   torch nn.Linear layout (fc1, fc2)
    w3     : (emb_dim, hidden_dim)   torch nn.Linear layout (fc3)
    compute_dtype: optional dtype for the matmul inputs (e.g. jnp.bfloat16 on
        v5e); f32 accumulation / f32 SiLU are kept inside the kernel.
    """
    orig_shape = x.shape
    E = orig_shape[-1]
    H, E1 = w1.shape
    assert E1 == E and w2.shape == (H, E) and w3.shape == (E, H)

    out_dtype = x.dtype
    x2d = x.reshape(-1, E)
    M = x2d.shape[0]

    # One XLA transpose per call (amortized over all token tiles) so the
    # kernel sees natural-layout weight tiles.
    w1t, w2t, w3t = w1.T, w2.T, w3.T
    if compute_dtype is not None:
        x2d = x2d.astype(compute_dtype)
        w1t = w1t.astype(compute_dtype)
        w2t = w2t.astype(compute_dtype)
        w3t = w3t.astype(compute_dtype)

    x_bytes = jnp.dtype(x2d.dtype).itemsize
    w_bytes = jnp.dtype(w1t.dtype).itemsize
    min_tm = _min_token_tile(x_bytes)

    # Generation-aware VMEM budgeting.
    cap = _vmem_capacity_bytes()
    if cap >= 96 * _MIB:                       # v5e / v6e: 128 MiB physical
        vmem_limit = 104 * _MIB
    else:                                      # v7x: 64 MiB physical
        vmem_limit = max(32 * _MIB, min(cap - 8 * _MIB, 56 * _MIB))
    budget = max(16 * _MIB, vmem_limit - 4 * _MIB)

    tm, th = _auto_tiles(M, E, H, x_bytes, w_bytes, budget, min_tm, tm, th)

    # Give both TensorCores work on multi-TC chips: the token axis is the
    # "parallel" one, so nm must be >= 2 when possible.
    if _num_tensorcores() >= 2 and _round_up(M, tm) // tm < 2 and M > min_tm:
        tm = max(min_tm, _round_up((M + 1) // 2, min_tm))

    M_pad = _round_up(M, tm)
    H_pad = _round_up(H, th)
    nm = M_pad // tm
    nk = H_pad // th

    if M_pad != M:
        # Padded token rows compute zeros and are sliced off.
        x2d = jnp.pad(x2d, ((0, M_pad - M), (0, 0)))
    if H_pad != H:
        # Zero-padded hidden units contribute silu(0) * 0 = 0, multiplied by
        # zero rows of W3^T -> result is exact.
        w1t = jnp.pad(w1t, ((0, 0), (0, H_pad - H)))
        w2t = jnp.pad(w2t, ((0, 0), (0, H_pad - H)))
        w3t = jnp.pad(w3t, ((0, H_pad - H), (0, 0)))

    cost = pl.CostEstimate(
        flops=int(6 * M_pad * E * H_pad),
        transcendentals=int(M_pad * H_pad),
        bytes_accessed=int(nm * 3 * E * H_pad * w_bytes + 2 * M_pad * E * x_bytes),
    )

    out = pl.pallas_call(
        ffn_kernel,
        out_shape=jax.ShapeDtypeStruct((M_pad, E), out_dtype),
        grid_spec=pltpu.PrefetchScalarGridSpec(
            num_scalar_prefetch=0,
            grid=(nm, nk),
            in_specs=[
                pl.BlockSpec((tm, E), lambda i, k: (i, 0)),   # x token tile
                pl.BlockSpec((E, th), lambda i, k: (0, k)),   # W1^T slice
                pl.BlockSpec((E, th), lambda i, k: (0, k)),   # W2^T slice
                pl.BlockSpec((th, E), lambda i, k: (k, 0)),   # W3^T slice
            ],
            out_specs=pl.BlockSpec((tm, E), lambda i, k: (i, 0)),
            scratch_shapes=[pltpu.VMEM((tm, E), jnp.float32)],
        ),
        compiler_params=pltpu.CompilerParams(
            dimension_semantics=("parallel", "arbitrary"),
            vmem_limit_bytes=int(vmem_limit),
        ),
        cost_estimate=cost,
    )(x2d, w1t, w2t, w3t)

    if M_pad != M:
        out = out[:M]
    return out.reshape(orig_shape)


def feed_forward_ref(x, w1, w2, w3):
    """Pure-JAX reference matching the PyTorch module exactly."""
    x_fc1 = x @ w1.T
    x_fc2 = x @ w2.T
    h = (x_fc1 * jax.nn.sigmoid(x_fc1)) * x_fc2
    return h @ w3.T


if __name__ == "__main__":
    # --- Test 1: toy config matching the original module demo --------------
    batch, seq = 2, 8
    emb_dim, hidden_dim = 32, 64
    kx, k1, k2, k3 = jax.random.split(jax.random.PRNGKey(0), 4)
    x = jax.random.normal(kx, (batch, seq, emb_dim), dtype=jnp.float32)
    # Torch nn.Linear layout: [out_features, in_features]
    w1 = jax.random.normal(k1, (hidden_dim, emb_dim), dtype=jnp.float32) * 0.05
    w2 = jax.random.normal(k2, (hidden_dim, emb_dim), dtype=jnp.float32) * 0.05
    w3 = jax.random.normal(k3, (emb_dim, hidden_dim), dtype=jnp.float32) * 0.05

    out = jax.block_until_ready(feed_forward(x, w1, w2, w3))
    ref = feed_forward_ref(x, w1, w2, w3)
    assert out.shape == ref.shape == (batch, seq, emb_dim)
    assert jnp.allclose(out, ref, atol=1e-4, rtol=1e-4), "toy config mismatch"

    # --- Test 2: exercises hidden-dim tiling (nk > 1) and ragged token pad --
    batch2, seq2 = 3, 13                       # 39 tokens -> padded to tm
    emb2, hid2 = 256, 384
    kx, k1, k2, k3 = jax.random.split(jax.random.PRNGKey(1), 4)
    x2 = jax.random.normal(kx, (batch2, seq2, emb2), dtype=jnp.float32)
    w1b = jax.random.normal(k1, (hid2, emb2), dtype=jnp.float32) * 0.05
    w2b = jax.random.normal(k2, (hid2, emb2), dtype=jnp.float32) * 0.05
    w3b = jax.random.normal(k3, (emb2, hid2), dtype=jnp.float32) * 0.05

    out2 = jax.block_until_ready(feed_forward(x2, w1b, w2b, w3b, tm=32, th=128))
    ref2 = feed_forward_ref(x2, w1b, w2b, w3b)
    assert out2.shape == ref2.shape == (batch2, seq2, emb2)
    # Looser tolerance: reference matmuls outside the kernel use XLA's default
    # reduced MXU precision and a different reduction order.
    assert jnp.allclose(out2, ref2, atol=3e-2, rtol=3e-2), "tiled config mismatch"

    # --- Test 3: hidden_dim not a multiple of 128 (exercises H zero-pad) ----
    batch3, seq3 = 1, 10
    emb3, hid3 = 128, 200
    kx, k1, k2, k3 = jax.random.split(jax.random.PRNGKey(2), 4)
    x3 = jax.random.normal(kx, (batch3, seq3, emb3), dtype=jnp.float32)
    w1c = jax.random.normal(k1, (hid3, emb3), dtype=jnp.float32) * 0.05
    w2c = jax.random.normal(k2, (hid3, emb3), dtype=jnp.float32) * 0.05
    w3c = jax.random.normal(k3, (emb3, hid3), dtype=jnp.float32) * 0.05

    out3 = jax.block_until_ready(feed_forward(x3, w1c, w2c, w3c))
    ref3 = feed_forward_ref(x3, w1c, w2c, w3c)
    assert out3.shape == ref3.shape == (batch3, seq3, emb3)
    assert jnp.allclose(out3, ref3, atol=2e-2, rtol=2e-2), "padded-H config mismatch"

    print("KERNEL_OK")
</pallas_src>

<mosaic_0001>
module attributes {stable_mosaic.version = 11 : i64} {
  func.func @ffn_kernel(%arg0: i32, %arg1: i32, %arg2: memref<16x32xf32, #tpu.memory_space<vmem>>, %arg3: memref<32x128xf32, #tpu.memory_space<vmem>>, %arg4: memref<32x128xf32, #tpu.memory_space<vmem>>, %arg5: memref<128x32xf32, #tpu.memory_space<vmem>>, %arg6: memref<16x32xf32, #tpu.memory_space<vmem>>, %arg7: memref<16x32xf32, #tpu.memory_space<vmem>>) attributes {dimension_semantics = [#tpu.dimension_semantics<parallel>, #tpu.dimension_semantics<arbitrary>], iteration_bounds = array<i64: 1, 1>, scalar_prefetch = 0 : i64, scratch_operands = 1 : i64, tpu.core_type = #tpu.core_type<tc>, window_params = [{transform_indices = @transform_0, window_bounds = array<i64: 16, 32>}, {transform_indices = @transform_1, window_bounds = array<i64: 32, 128>}, {transform_indices = @transform_2, window_bounds = array<i64: 32, 128>}, {transform_indices = @transform_3, window_bounds = array<i64: 128, 32>}, {transform_indices = @transform_4, window_bounds = array<i64: 16, 32>}]} {
    %c0_i32 = arith.constant 0 : i32
    %0 = arith.cmpi eq, %arg1, %c0_i32 : i32
    %1 = arith.extui %0 : i1 to i32
    %c0_i32_0 = arith.constant 0 : i32
    %2 = arith.cmpi ne, %1, %c0_i32_0 : i32
    scf.if %2 {
      %cst_17 = arith.constant 0.000000e+00 : f32
      %23 = vector.broadcast %cst_17 : f32 to vector<16x32xf32>
      %c0_18 = arith.constant 0 : index
      %c0_19 = arith.constant 0 : index
      %24 = vector.load %arg7[%c0_18, %c0_19] : memref<16x32xf32, #tpu.memory_space<vmem>>, vector<16x32xf32>
      tpu.vector_store %arg7[%c0_18, %c0_19], %23 {strides = array<i32>} : memref<16x32xf32, #tpu.memory_space<vmem>>, vector<16x32xf32>,
    } else {
    }
    %c0 = arith.constant 0 : index
    %c0_1 = arith.constant 0 : index
    %3 = vector.load %arg2[%c0, %c0_1] : memref<16x32xf32, #tpu.memory_space<vmem>>, vector<16x32xf32>
    %c0_2 = arith.constant 0 : index
    %c0_3 = arith.constant 0 : index
    %4 = vector.load %arg3[%c0_2, %c0_3] : memref<32x128xf32, #tpu.memory_space<vmem>>, vector<32x128xf32>
    %cst = arith.constant dense<0.000000e+00> : vector<16x128xf32>
    %5 = tpu.matmul %3, %4, %cst {dimension_numbers = #tpu.dot_dimension_numbers<[1], [0], [0], [1], [0, 0, 1, 1], [], []>} : vector<16x32xf32>, vector<32x128xf32>, vector<16x128xf32> -> vector<16x128xf32>
    %c0_4 = arith.constant 0 : index
    %c0_5 = arith.constant 0 : index
    %6 = vector.load %arg4[%c0_4, %c0_5] : memref<32x128xf32, #tpu.memory_space<vmem>>, vector<32x128xf32>
    %cst_6 = arith.constant dense<0.000000e+00> : vector<16x128xf32>
    %7 = tpu.matmul %3, %6, %cst_6 {dimension_numbers = #tpu.dot_dimension_numbers<[1], [0], [0], [1], [0, 0, 1, 1], [], []>} : vector<16x32xf32>, vector<32x128xf32>, vector<16x128xf32> -> vector<16x128xf32>
    %8 = arith.negf %5 : vector<16x128xf32>
    %9 = math.exp %8 : vector<16x128xf32>
    %cst_7 = arith.constant 1.000000e+00 : f32
    %10 = vector.broadcast %cst_7 : f32 to vector<16x128xf32>
    %11 = arith.addf %10, %9 : vector<16x128xf32>
    %12 = arith.divf %10, %11 : vector<16x128xf32>
    %13 = arith.mulf %5, %12 : vector<16x128xf32>
    %14 = arith.mulf %13, %7 : vector<16x128xf32>
    %c0_8 = arith.constant 0 : index
    %c0_9 = arith.constant 0 : index
    %15 = vector.load %arg7[%c0_8, %c0_9] : memref<16x32xf32, #tpu.memory_space<vmem>>, vector<16x32xf32>
    %c0_10 = arith.constant 0 : index
    %c0_11 = arith.constant 0 : index
    %16 = vector.load %arg5[%c0_10, %c0_11] : memref<128x32xf32, #tpu.memory_space<vmem>>, vector<128x32xf32>
    %cst_12 = arith.constant dense<0.000000e+00> : vector<16x32xf32>
    %17 = tpu.matmul %14, %16, %cst_12 {dimension_numbers = #tpu.dot_dimension_numbers<[1], [0], [0], [1], [0, 0, 1, 1], [], []>} : vector<16x128xf32>, vector<128x32xf32>, vector<16x32xf32> -> vector<16x32xf32>
    %18 = arith.addf %15, %17 : vector<16x32xf32>
    %c0_13 = arith.constant 0 : index
    %c0_14 = arith.constant 0 : index
    %19 = vector.load %arg7[%c0_13, %c0_14] : memref<16x32xf32, #tpu.memory_space<vmem>>, vector<16x32xf32>
    tpu.vector_store %arg7[%c0_13, %c0_14], %18 {strides = array<i32>} : memref<16x32xf32, #tpu.memory_space<vmem>>, vector<16x32xf32>,
    %c0_i32_15 = arith.constant 0 : i32
    %20 = arith.cmpi eq, %arg1, %c0_i32_15 : i32
    %21 = arith.extui %20 : i1 to i32
    %c0_i32_16 = arith.constant 0 : i32
    %22 = arith.cmpi ne, %21, %c0_i32_16 : i32
    scf.if %22 {
      %c0_17 = arith.constant 0 : index
      %c0_18 = arith.constant 0 : index
      %23 = vector.load %arg7[%c0_17, %c0_18] : memref<16x32xf32, #tpu.memory_space<vmem>>, vector<16x32xf32>
      %c0_19 = arith.constant 0 : index
      %c0_20 = arith.constant 0 : index
      %24 = vector.load %arg6[%c0_19, %c0_20] : memref<16x32xf32, #tpu.memory_space<vmem>>, vector<16x32xf32>
      tpu.vector_store %arg6[%c0_19, %c0_20], %23 {strides = array<i32>} : memref<16x32xf32, #tpu.memory_space<vmem>>, vector<16x32xf32>,
    } else {
    }
    return
  }
  func.func @transform_0(%arg0: i32, %arg1: i32) -> (i32, i32) {
    %c0_i32 = arith.constant 0 : i32
    %c0_i32_0 = arith.constant 0 : i32
    return %arg0, %c0_i32 : i32, i32
  }
  func.func @transform_1(%arg0: i32, %arg1: i32) -> (i32, i32) {
    %c0_i32 = arith.constant 0 : i32
    %c0_i32_0 = arith.constant 0 : i32
    return %c0_i32, %arg1 : i32, i32
  }
  func.func @transform_2(%arg0: i32, %arg1: i32) -> (i32, i32) {
    %c0_i32 = arith.constant 0 : i32
    %c0_i32_0 = arith.constant 0 : i32
    return %c0_i32, %arg1 : i32, i32
  }
  func.func @transform_3(%arg0: i32, %arg1: i32) -> (i32, i32) {
    %c0_i32 = arith.constant 0 : i32
    %c0_i32_0 = arith.constant 0 : i32
    return %arg1, %c0_i32 : i32, i32
  }
  func.func @transform_4(%arg0: i32, %arg1: i32) -> (i32, i32) {
    %c0_i32 = arith.constant 0 : i32
    %c0_i32_0 = arith.constant 0 : i32
    return %arg0, %c0_i32 : i32, i32
  }
}

</mosaic_0001>

<bundles_post_ra>
// kernel: tpu_custom_call.1
= control target key start
LH: loop header
LB: loop body
LE: loop exit
PB: predicated region body
PF: predicated region fallthrough
CT: control target
= control target key end

     0   :  { %vm22_vm0 = vcmask 261120   ;;  %s575_s0 = inlined_call_operand.vmem [shape: f32[16,32], index: 0, kind: input, shape index: {}]   ;;  %s576_s1 = inlined_call_operand.vmem [shape: f32[32,128], index: 1, kind: input, shape index: {}]   ;;  %s577_s2 = inlined_call_operand.vmem [shape: f32[32,128], index: 2, kind: input, shape index: {}]   ;;  %s578_s3 = inlined_call_operand.vmem [shape: f32[128,32], index: 3, kind: input, shape index: {}]   ;;  %s579_s4 = inlined_call_operand.hbm [shape: f32[16,32], index: 4, kind: output, shape index: {}]  }
   0x1   :  { %v30_v0 = vld [vmem:[%s576_s1 + $0x18] sm:$0xff]  ;;  %v29_v1 = vld [vmem:[%s576_s1 + $0x10] sm:$0xff]  ;;  %v25_v2 = vld [vmem:[%s575_s0] sm:$0xff] }
   0x2   :  { %364 = vmatprep.subr.mxu1 %v30_v0  ;;  %v28_v3 = vld [vmem:[%s576_s1 + $0x8] sm:$0xff]  ;;  %372 = vmatprep.mubr.msk.f32.mxu1 %vm22_vm0, %v25_v2 }
   0x3   :  { %365 = vmatpush3.msra.mxu1 %v30_v0 }
   0x4   :  { %366 = vmatprep.subr.mxu1 %v29_v1 }
   0x5   :  { %9 = vsyncpa [#allocation4], 0  ;;  %367 = vmatpush3.msra.mxu1 %v29_v1  ;;  %v27_v4 = vld [vmem:[%s576_s1] sm:$0xff]  ;;  %v26_v5 = vld [vmem:[%s575_s0 + $0x8] sm:$0xff]  ;;  %v455_v26 = vmov 0.0  }
   0x6   :  { %368 = vmatprep.subr.mxu1 %v28_v3  ;;  %v116_v6 = vld [vmem:[%s577_s2 + $0x18] sm:$0xff]  ;;  %v115_v7 = vld [vmem:[%s577_s2 + $0x10] sm:$0xff]  ;;  %v114_v8 = vld [vmem:[%s577_s2 + $0x8] sm:$0xff]  ;;  %24 = vst.msk [vmem:[#allocation2 + $0x8] sm:$0xff] %vm22_vm0, %v455_v26 }
   0x7   :  { %369 = vmatpush3.msra.mxu1 %v28_v3  ;;  %v113_v9 = vld [vmem:[%s577_s2] sm:$0xff]  ;;  %v225_v10 = vld [vmem:[%s578_s3 + $0x78] sm:$0xff]  ;;  %v224_v11 = vld [vmem:[%s578_s3 + $0x70] sm:$0xff]  ;;  %23 = vst.msk [vmem:[#allocation2] sm:$0xff] %vm22_vm0, %v455_v26 }
   0x8   :  { %370 = vmatprep.subr.mxu1 %v27_v4  ;;  %386 = vmatprep.subr.mxu0 %v225_v10  ;;  %v223_v12 = vld [vmem:[%s578_s3 + $0x68] sm:$0xff]  ;;  %v222_v13 = vld [vmem:[%s578_s3 + $0x60] sm:$0xff]  ;;  %v221_v14 = vld [vmem:[%s578_s3 + $0x58] sm:$0xff] }
   0x9   :  { %371 = vmatpush3.msra.mxu1 %v27_v4  ;;  %387 = vmatpush3.msra.mxu0 %v225_v10  ;;  %v220_v15 = vld [vmem:[%s578_s3 + $0x50] sm:$0xff]  ;;  %v219_v16 = vld [vmem:[%s578_s3 + $0x48] sm:$0xff]  ;;  %v218_v17 = vld [vmem:[%s578_s3 + $0x40] sm:$0xff] }
   0xa   :  { %373 = vmatmul.mubr.msk.f32.vlgmr.msra.gmra.mxu1 %vm22_vm0, %v26_v5  ;;  %375 = vmatprep.subr.mxu1 %v116_v6  ;;  %v217_v18 = vld [vmem:[%s578_s3 + $0x38] sm:$0xff]  ;;  %v216_v19 = vld [vmem:[%s578_s3 + $0x30] sm:$0xff]  ;;  %v215_v20 = vld [vmem:[%s578_s3 + $0x28] sm:$0xff] }
   0xb   :  { %376 = vmatpush3.msra.mxu1 %v116_v6  ;;  %383 = vmatprep.mubr.msk.f32.mxu1 %vm22_vm0, %v25_v2  ;;  %v214_v21 = vld [vmem:[%s578_s3 + $0x20] sm:$0xff]  ;;  %v213_v22 = vld [vmem:[%s578_s3 + $0x18] sm:$0xff]  ;;  %v212_v23 = vld [vmem:[%s578_s3 + $0x10] sm:$0xff] }
   0xc   :  { %377 = vmatprep.subr.mxu1 %v115_v7  ;;  %388 = vmatprep.subr.mxu0 %v224_v11  ;;  %v211_v24 = vld [vmem:[%s578_s3 + $0x8] sm:$0xff]  ;;  %v210_v25 = vld [vmem:[%s578_s3] sm:$0xff]  ;;  %s456_s3 = smov [#allocation3]  }
   0xd   :  { %378 = vmatpush3.msra.mxu1 %v115_v7  ;;  %389 = vmatpush3.msra.mxu0 %v224_v11  ;;  %v209_v43 = vld [vmem:[#allocation2 + $0x8] sm:$0xff]  ;;  %s317_s10 = sshll.u32 %s456_s3, 4  ;;  %s318_s10 = int_to_ptr.vmem [resolvable:$true] %s317_s10 }
   0xe   :  { %379 = vmatprep.subr.mxu1 %v114_v8  ;;  %390 = vmatprep.subr.mxu0 %v223_v12  ;;  %v208_v45 = vld [vmem:[#allocation2] sm:$0xff]  ;;  %s433_s11 = scalar_lea.vmem %s318_s10, 256  ;;  %p438_p1 = scmp.lt.s32.totalorder %s318_s10, %s318_s10 }
   0xf   :  { %380 = vmatpush3.msra.mxu1 %v114_v8  ;;  %391 = vmatpush3.msra.mxu0 %v223_v12  ;;  %p434_p0 = scmp.ne.s32.totalorder %s318_s10, %s433_s11  ;;  %p439_p2 = scmp.lt.s32.totalorder %s433_s11, %s433_s11 }
  0x10   :  { %381 = vmatprep.subr.mxu1 %v113_v9  ;;  %392 = vmatprep.subr.mxu0 %v222_v13 }
  0x11   :  { %382 = vmatpush3.msra.mxu1 %v113_v9  ;;  %393 = vmatpush3.msra.mxu0 %v222_v13  ;;  %p440_p3 = por %p439_p2, %p438_p1 }
  0x12   :  { %384 = vmatmul.mubr.msk.f32.vlgmr.msra.gmra.mxu1 %vm22_vm0, %v26_v5  ;;  %394 = vmatprep.subr.mxu0 %v221_v14 }
  0x13   :  { %395 = vmatpush3.msra.mxu0 %v221_v14  ;;  %p441_p4 = pnand %p440_p3, %p434_p0 }
  0x14   :  { %396 = vmatprep.subr.mxu0 %v220_v15 }
  0x15   :  { %397 = vmatpush3.msra.mxu0 %v220_v15 }
  0x16   :  { %398 = vmatprep.subr.mxu0 %v219_v16 }
  0x17   :  { %399 = vmatpush3.msra.mxu0 %v219_v16 }
  0x18   :  { %400 = vmatprep.subr.mxu0 %v218_v17 }
  0x19   :  { %401 = vmatpush3.msra.mxu0 %v218_v17 }
  0x1a   :  { %402 = vmatprep.subr.mxu0 %v217_v18 }
  0x1b   :  { %403 = vmatpush3.msra.mxu0 %v217_v18 }
  0x1c   :  { %404 = vmatprep.subr.mxu0 %v216_v19 }
  0x1d   :  { %405 = vmatpush3.msra.mxu0 %v216_v19 }
  0x1e   :  { %406 = vmatprep.subr.mxu0 %v215_v20 }
  0x1f   :  { %407 = vmatpush3.msra.mxu0 %v215_v20 }
  0x20   :  { %408 = vmatprep.subr.mxu0 %v214_v21 }
  0x21   :  { %409 = vmatpush3.msra.mxu0 %v214_v21 }
  0x22   :  { %410 = vmatprep.subr.mxu0 %v213_v22 }
  0x23   :  { %411 = vmatpush3.msra.mxu0 %v213_v22 }
  0x24   :  { %412 = vmatprep.subr.mxu0 %v212_v23 }
  0x25   :  { %413 = vmatpush3.msra.mxu0 %v212_v23 }
  0x26   :  { %414 = vmatprep.subr.mxu0 %v211_v24 }
  0x27   :  { %415 = vmatpush3.msra.mxu0 %v211_v24 }
  0x28   :  { %416 = vmatprep.subr.mxu0 %v210_v25 }
  0x29   :  { %417 = vmatpush3.msra.mxu0 %v210_v25 }
  0xca   :  { %v374_v27 = vpop.f32.mrf.mxu1 }
  0xcb   :  { %v333_v28 = vmul.f32 -1.442695, %v374_v27 }
  0xcc   :  { %v104_v29 = vpop.f32.mrf.mxu1 }
  0xcd   :  { %425 = vpow2.f32 %v333_v28  ;;  %v332_v30 = vmul.f32 -1.442695, %v104_v29 }
  0xcf   :  { %427 = vpow2.f32 %v332_v30 }
  0xd2   :  { %v385_v36 = vpop.f32.mrf.mxu1 }
  0xd4   :  { %v183_v40 = vpop.f32.mrf.mxu1 }
  0xda   :  { %v426_v31 = vpop.eup %425 }
  0xdb   :  { %v199_v32 = vadd.f32 1.0, %v426_v31 }
  0xdc   :  { %v428_v33 = vpop.eup %427 }
  0xdd   :  { %429 = vrcp.f32 %v199_v32  ;;  %v198_v34 = vadd.f32 1.0, %v428_v33 }
  0xdf   :  { %431 = vrcp.f32 %v198_v34 }
  0xea   :  { %v430_v35 = vpop.eup %429 }
  0xeb   :  { %v205_v38 = vmul.f32 %v430_v35, %v374_v27 }
  0xec   :  { %v432_v37 = vpop.eup %431 }
  0xed   :  { %v204_v39 = vmul.f32 %v432_v37, %v104_v29  ;;  %v207_v42 = vmul.f32 %v385_v36, %v205_v38 }
  0xef   :  { %v206_v41 = vmul.f32 %v204_v39, %v183_v40 }
  0xf1   :  { %418 = vmatprep.mubr.f32.mxu0 %v206_v41 }
  0xf2   :  { %419 = vmatmul.mubr.f32.vlgmr.msra.gmra.mxu0 %v207_v42 }
 0x1b2   :  { %v420_v44 = vpop.f32.mrf.mxu0 }
 0x1b3   :  { %v302_v46 = vadd.f32 %v420_v44, %v209_v43 }
 0x1b4   :  { %v292_v47 = vpop.f32.mrf.mxu0 }
 0x1b5   :  { %304 = vst.msk [vmem:[#allocation2 + $0x8] sm:$0xff] %vm22_vm0, %v302_v46  ;;  %v301_v48 = vadd.f32 %v292_v47, %v208_v45 }
 0x1b7   :  { %303 = vst.msk [vmem:[#allocation2] sm:$0xff] %vm22_vm0, %v301_v48 }
 0x1bc   :  { %v309_v49 = vld [vmem:[#allocation2 + $0x8] sm:$0xff] }
 0x1bd   :  { %311 = vst.msk [vmem:[#allocation3 + $0x8] sm:$0xff] %vm22_vm0, %v309_v49 }
 0x1be   :  { %v308_v50 = vld [vmem:[#allocation2] sm:$0xff] }
 0x1bf   :  { %310 = vst.msk [vmem:[#allocation3] sm:$0xff] %vm22_vm0, %v308_v50 }
 0x1c0   :  { %444 = shalt.err (!%p441_p4)
}
 0x1c1   :  { %s457_s2 = smov 128   ;;  %s458_s12 = smov 8  }
 0x1c2   :  { %323 = dma.vmem_to_hbm [thread:$0]  %s318_s10, 256, %s579_s4, [#allocation4], %s457_s2, %s457_s2, %s458_s12  }
 0x1c3   :  { %453 = dma.done.wait [#allocation4], 256  }
 0x1c4   :  { %454 = vsyncadd [#allocation4], 4294967040 }
 0x1c5   :  { %327 = vsyncpa [#allocation4], 1 }

</bundles_post_ra>
